<compile_context>
chip_gen: v5e
topology: v5e:2x2
jax: 0.10.0
libtpu: 0.0.40
codegen_flags: <defaults>
</compile_context>

<pallas_src>
import math

import jax
import jax.numpy as jnp
from jax.experimental import pallas as pl
from jax.experimental.pallas import tpu as pltpu


def sa_kernel(xm_ref, xa_ref, w1_ref, b1_ref, w2_ref, b2_ref, o_ref):
    # xm_ref: (Cm, TP)   main-feature tile (pixels on lanes)
    # xa_ref: (Ca, TP)   attention-feature tile
    # w1_ref: (mid, Ca)  1x1 conv1 weight
    # b1_ref: (mid, 1)
    # w2_ref: (mid, 1)   1x1 conv2 weight (single output channel)
    # b2_ref: (1, 1)
    # o_ref : (Cm, TP)

    # conv1 (1x1) + ReLU: (mid, Ca) @ (Ca, TP) -> (mid, TP) on the MXU.
    h = jnp.dot(w1_ref[...], xa_ref[...], preferred_element_type=jnp.float32)
    h = jnp.maximum(h + b1_ref[...], 0.0)

    # conv2 (1x1) to a single channel: VPU multiply + sublane reduce (avoids a
    # degenerate M=1 MXU op), then sigmoid on the EUP.
    logit = jnp.sum(h * w2_ref[...], axis=0, keepdims=True) + b2_ref[...]   # (1, TP)
    y = jax.nn.sigmoid(logit).astype(o_ref.dtype)                           # (1, TP)

    # Sublane-broadcast the attention row over the main channels; multiply in
    # the native dtype (no full-tile f32 casts of the large tensor).
    o_ref[...] = xm_ref[...] * y


def _choose_tp(HW, Cm, Ca, itemsize, vmem_budget_bytes):
    """Largest pixel tile (multiple of 128, dividing HW) within the VMEM budget."""
    # double-buffered streams: xm in + xa in + out  ->  2 * (2*Cm + Ca) bytes/pixel
    per_px = 2 * (2 * Cm + Ca) * itemsize
    max_tp = max(128, vmem_budget_bytes // max(per_px, 1))
    max_tp = min(max_tp, 16384)  # keep tiles modest so the grid stays balanced
    best = None
    tp = 128
    while tp <= HW:
        if HW % tp == 0 and tp <= max_tp:
            best = tp
        tp += 128
    if best is None:
        # HW < 128 or no 128-multiple divides it: full-row block equals the full
        # array dim, which satisfies the (8, 128) tiling constraint.
        best = HW
    return best


def sa_layer(main_nchw, att_nchw, w1, b1, w2, b2, *, tp=None,
             vmem_budget_bytes=12 * 1024 * 1024):
    """main_nchw: (N, Cm, H, W); att_nchw: (N, Ca, H, W).
    w1: (mid, Ca), b1: (mid, 1), w2: (mid, 1), b2: (1, 1)."""
    N, Cm, H, W = main_nchw.shape
    Ca = att_nchw.shape[1]
    mid = w1.shape[0]
    HW = H * W

    # Free reshapes (no transposes): NCHW -> (N, C, H*W), pixels on the lane axis.
    xm = main_nchw.reshape(N, Cm, HW)
    xa = att_nchw.reshape(N, Ca, HW)

    if tp is None:
        tp = _choose_tp(HW, Cm, Ca, jnp.dtype(main_nchw.dtype).itemsize,
                        vmem_budget_bytes)
    assert HW % tp == 0, "pixel tile must divide H*W"

    # Keep at least 2 grid steps when possible so v7x's two TensorCores get work.
    while (N * (HW // tp) < 2 and tp >= 256 and (tp // 2) % 128 == 0
           and HW % (tp // 2) == 0):
        tp //= 2

    grid = (N, HW // tp)

    out = pl.pallas_call(
        sa_kernel,
        out_shape=jax.ShapeDtypeStruct((N, Cm, HW), main_nchw.dtype),
        grid=grid,
        in_specs=[
            pl.BlockSpec((None, Cm, tp), lambda n, j: (n, 0, j)),   # main tile
            pl.BlockSpec((None, Ca, tp), lambda n, j: (n, 0, j)),   # attention tile
            pl.BlockSpec((mid, Ca), lambda n, j: (0, 0)),           # conv1 weight
            pl.BlockSpec((mid, 1), lambda n, j: (0, 0)),            # conv1 bias
            pl.BlockSpec((mid, 1), lambda n, j: (0, 0)),            # conv2 weight
            pl.BlockSpec((1, 1), lambda n, j: (0, 0)),              # conv2 bias
        ],
        out_specs=pl.BlockSpec((None, Cm, tp), lambda n, j: (n, 0, j)),
        compiler_params=pltpu.CompilerParams(
            dimension_semantics=("parallel", "parallel"),
            vmem_limit_bytes=32 * 1024 * 1024,
        ),
    )(xm, xa, w1, b1, w2, b2)

    return out.reshape(N, Cm, H, W)


def init_salayer_params(key, main_channel, reduction=16, attention_channel=None):
    """Synthetic init mirroring the PyTorch module's shapes.
    conv1: Conv2d(att_c, mid_c, 1) weight (mid_c, att_c, 1, 1) -> stored (mid_c, att_c)
    conv2: Conv2d(mid_c, 1, 1)     weight (1, mid_c, 1, 1)     -> stored (mid_c, 1)
    kaiming_normal_(fan_out, relu) on weights; PyTorch default uniform on biases."""
    if attention_channel is None:
        attention_channel = main_channel
    mid_c = max(8, main_channel // reduction)

    k1, k2, k3, k4 = jax.random.split(key, 4)

    std1 = math.sqrt(2.0 / mid_c)                      # fan_out = mid_c * 1 * 1
    w1 = std1 * jax.random.normal(k1, (mid_c, attention_channel), jnp.float32)
    bound1 = 1.0 / math.sqrt(attention_channel)
    b1 = jax.random.uniform(k2, (mid_c, 1), jnp.float32, -bound1, bound1)

    std2 = math.sqrt(2.0 / 1.0)                        # fan_out = 1 * 1 * 1
    w2 = std2 * jax.random.normal(k3, (mid_c, 1), jnp.float32)
    bound2 = 1.0 / math.sqrt(mid_c)
    b2 = jax.random.uniform(k4, (1, 1), jnp.float32, -bound2, bound2)

    return w1, b1, w2, b2


def sa_layer_ref(main_nchw, att_nchw, w1, b1, w2, b2):
    """Pure-JAX reference of the PyTorch forward (for correctness check)."""
    N, Ca, H, W = att_nchw.shape
    xa = att_nchw.reshape(N, Ca, H * W)                            # (N, Ca, P)
    h = jnp.maximum(jnp.einsum('mc,ncp->nmp', w1, xa) + b1[None], 0.0)
    logit = jnp.sum(h * w2[None], axis=1, keepdims=True) + b2[None]
    y = jax.nn.sigmoid(logit).reshape(N, 1, H, W)
    return main_nchw * y


if __name__ == "__main__":
    key = jax.random.PRNGKey(0)
    kp, kx = jax.random.split(key)

    N, C, H, W = 2, 4, 16, 16
    w1, b1, w2, b2 = init_salayer_params(kp, main_channel=C, reduction=16)

    x = jax.random.normal(kx, (N, C, H, W), jnp.float32)

    # attention_feature=None in PyTorch -> use the main feature
    out = sa_layer(x, x, w1, b1, w2, b2)
    out = jax.block_until_ready(out)

    ref = sa_layer_ref(x, x, w1, b1, w2, b2)
    assert out.shape == (N, C, H, W)
    assert jnp.allclose(out, ref, atol=1e-5, rtol=1e-5)

    print("KERNEL_OK")
</pallas_src>

<mosaic_0001>
module attributes {stable_mosaic.version = 11 : i64} {
  func.func @sa_kernel(%arg0: i32, %arg1: i32, %arg2: memref<1x4x256xf32, #tpu.memory_space<vmem>>, %arg3: memref<1x4x256xf32, #tpu.memory_space<vmem>>, %arg4: memref<8x4xf32, #tpu.memory_space<vmem>>, %arg5: memref<8x1xf32, #tpu.memory_space<vmem>>, %arg6: memref<8x1xf32, #tpu.memory_space<vmem>>, %arg7: memref<1x1xf32, #tpu.memory_space<vmem>>, %arg8: memref<1x4x256xf32, #tpu.memory_space<vmem>>) attributes {dimension_semantics = [#tpu.dimension_semantics<parallel>, #tpu.dimension_semantics<parallel>], iteration_bounds = array<i64: 2, 1>, scalar_prefetch = 0 : i64, scratch_operands = 0 : i64, tpu.core_type = #tpu.core_type<tc>, window_params = [{transform_indices = @transform_0, window_bounds = array<i64: 1, 4, 256>}, {transform_indices = @transform_1, window_bounds = array<i64: 1, 4, 256>}, {pipeline_mode = #tpu.pipeline_mode<synchronous>, transform_indices = @transform_2, window_bounds = array<i64: 8, 4>}, {pipeline_mode = #tpu.pipeline_mode<synchronous>, transform_indices = @transform_3, window_bounds = array<i64: 8, 1>}, {pipeline_mode = #tpu.pipeline_mode<synchronous>, transform_indices = @transform_4, window_bounds = array<i64: 8, 1>}, {pipeline_mode = #tpu.pipeline_mode<synchronous>, transform_indices = @transform_5, window_bounds = array<i64: 1, 1>}, {transform_indices = @transform_6, window_bounds = array<i64: 1, 4, 256>}]} {
    %c0 = arith.constant 0 : index
    %c0_0 = arith.constant 0 : index
    %0 = vector.load %arg4[%c0, %c0_0] : memref<8x4xf32, #tpu.memory_space<vmem>>, vector<8x4xf32>
    %c0_1 = arith.constant 0 : index
    %c0_2 = arith.constant 0 : index
    %c0_3 = arith.constant 0 : index
    %1 = vector.load %arg3[%c0_1, %c0_2, %c0_3] : memref<1x4x256xf32, #tpu.memory_space<vmem>>, vector<1x4x256xf32>
    %2 = vector.shape_cast %1 : vector<1x4x256xf32> to vector<4x256xf32>
    %cst = arith.constant dense<0.000000e+00> : vector<8x256xf32>
    %3 = tpu.matmul %0, %2, %cst {dimension_numbers = #tpu.dot_dimension_numbers<[1], [0], [0], [1], [0, 0, 1, 1], [], []>} : vector<8x4xf32>, vector<4x256xf32>, vector<8x256xf32> -> vector<8x256xf32>
    %c0_4 = arith.constant 0 : index
    %c0_5 = arith.constant 0 : index
    %4 = vector.load %arg5[%c0_4, %c0_5] : memref<8x1xf32, #tpu.memory_space<vmem>>, vector<8x1xf32>
    %5 = vector.broadcast %4 : vector<8x1xf32> to vector<8x256xf32>
    %6 = arith.addf %3, %5 : vector<8x256xf32>
    %cst_6 = arith.constant 0.000000e+00 : f32
    %7 = vector.broadcast %cst_6 : f32 to vector<8x256xf32>
    %8 = arith.maximumf %6, %7 : vector<8x256xf32>
    %c0_7 = arith.constant 0 : index
    %c0_8 = arith.constant 0 : index
    %9 = vector.load %arg6[%c0_7, %c0_8] : memref<8x1xf32, #tpu.memory_space<vmem>>, vector<8x1xf32>
    %10 = vector.broadcast %9 : vector<8x1xf32> to vector<8x256xf32>
    %11 = arith.mulf %8, %10 : vector<8x256xf32>
    %cst_9 = arith.constant dense<0.000000e+00> : vector<256xf32>
    %12 = vector.multi_reduction <add>, %11, %cst_9 [0] : vector<8x256xf32> to vector<256xf32>
    %13 = vector.shape_cast %12 : vector<256xf32> to vector<1x256xf32>
    %c0_10 = arith.constant 0 : index
    %c0_11 = arith.constant 0 : index
    %14 = vector.load %arg7[%c0_10, %c0_11] : memref<1x1xf32, #tpu.memory_space<vmem>>, vector<1x1xf32>
    %15 = vector.broadcast %14 : vector<1x1xf32> to vector<1x256xf32>
    %16 = arith.addf %13, %15 : vector<1x256xf32>
    %17 = arith.negf %16 : vector<1x256xf32>
    %18 = math.exp %17 : vector<1x256xf32>
    %cst_12 = arith.constant 1.000000e+00 : f32
    %19 = vector.broadcast %cst_12 : f32 to vector<1x256xf32>
    %20 = arith.addf %19, %18 : vector<1x256xf32>
    %21 = arith.divf %19, %20 : vector<1x256xf32>
    %c0_13 = arith.constant 0 : index
    %c0_14 = arith.constant 0 : index
    %c0_15 = arith.constant 0 : index
    %22 = vector.load %arg2[%c0_13, %c0_14, %c0_15] : memref<1x4x256xf32, #tpu.memory_space<vmem>>, vector<1x4x256xf32>
    %23 = vector.shape_cast %22 : vector<1x4x256xf32> to vector<4x256xf32>
    %24 = vector.broadcast %21 : vector<1x256xf32> to vector<4x256xf32>
    %25 = arith.mulf %23, %24 : vector<4x256xf32>
    %c0_16 = arith.constant 0 : index
    %c0_17 = arith.constant 0 : index
    %c0_18 = arith.constant 0 : index
    %26 = vector.load %arg8[%c0_16, %c0_17, %c0_18] : memref<1x4x256xf32, #tpu.memory_space<vmem>>, vector<1x4x256xf32>
    %27 = vector.shape_cast %26 : vector<1x4x256xf32> to vector<4x256xf32>
    %28 = vector.shape_cast %25 : vector<4x256xf32> to vector<1x4x256xf32>
    tpu.vector_store %arg8[%c0_16, %c0_17, %c0_18], %28 {strides = array<i32>} : memref<1x4x256xf32, #tpu.memory_space<vmem>>, vector<1x4x256xf32>,
    return
  }
  func.func @transform_0(%arg0: i32, %arg1: i32) -> (i32, i32, i32) {
    %c0_i32 = arith.constant 0 : i32
    %c0_i32_0 = arith.constant 0 : i32
    return %arg0, %c0_i32, %arg1 : i32, i32, i32
  }
  func.func @transform_1(%arg0: i32, %arg1: i32) -> (i32, i32, i32) {
    %c0_i32 = arith.constant 0 : i32
    %c0_i32_0 = arith.constant 0 : i32
    return %arg0, %c0_i32, %arg1 : i32, i32, i32
  }
  func.func @transform_2(%arg0: i32, %arg1: i32) -> (i32, i32) {
    %c0_i32 = arith.constant 0 : i32
    %c0_i32_0 = arith.constant 0 : i32
    %c0_i32_1 = arith.constant 0 : i32
    return %c0_i32, %c0_i32_0 : i32, i32
  }
  func.func @transform_3(%arg0: i32, %arg1: i32) -> (i32, i32) {
    %c0_i32 = arith.constant 0 : i32
    %c0_i32_0 = arith.constant 0 : i32
    %c0_i32_1 = arith.constant 0 : i32
    return %c0_i32, %c0_i32_0 : i32, i32
  }
  func.func @transform_4(%arg0: i32, %arg1: i32) -> (i32, i32) {
    %c0_i32 = arith.constant 0 : i32
    %c0_i32_0 = arith.constant 0 : i32
    %c0_i32_1 = arith.constant 0 : i32
    return %c0_i32, %c0_i32_0 : i32, i32
  }
  func.func @transform_5(%arg0: i32, %arg1: i32) -> (i32, i32) {
    %c0_i32 = arith.constant 0 : i32
    %c0_i32_0 = arith.constant 0 : i32
    %c0_i32_1 = arith.constant 0 : i32
    return %c0_i32, %c0_i32_0 : i32, i32
  }
  func.func @transform_6(%arg0: i32, %arg1: i32) -> (i32, i32, i32) {
    %c0_i32 = arith.constant 0 : i32
    %c0_i32_0 = arith.constant 0 : i32
    return %arg0, %c0_i32, %arg1 : i32, i32, i32
  }
}

</mosaic_0001>

<bundles_post_ra>
// kernel: tpu_custom_call.1
= control target key start
LH: loop header
LB: loop body
LE: loop exit
PB: predicated region body
PF: predicated region fallthrough
CT: control target
= control target key end

     0   :  { %s986_s0 = inlined_call_operand.vmem [shape: f32[2,4,256], index: 0, kind: input, shape index: {}]   ;;  %s987_s1 = inlined_call_operand.hbm [shape: f32[2,4,256], index: 1, kind: input, shape index: {}]   ;;  %s988_s2 = inlined_call_operand.vmem [shape: f32[8,4], index: 2, kind: input, shape index: {}]   ;;  %s989_s3 = inlined_call_operand.vmem [shape: f32[8,1], index: 3, kind: input, shape index: {}]   ;;  %s990_s4 = inlined_call_operand.vmem [shape: f32[8,1], index: 4, kind: input, shape index: {}]   ;;  %s991_s5 = inlined_call_operand.<no memory space> [shape: f32[1,1], index: 5, kind: input, shape index: {}]   ;;  %s992_s6 = inlined_call_operand.hbm [shape: f32[2,4,256], index: 6, kind: output, shape index: {}]  }
   0x1   :  { %v11_v0 = vstv %s991_s5 }
   0x2   :  { %12 = vst [vmem:[#allocation2] sm:$0x1] %v11_v0 }
   0x3   :  { %13 = vsyncpa [#allocation4], 0 }
   0x4   :  { %15 = vsyncpa [#allocation4 + $0x1], 0 }
   0x5   :  { %16 = vsyncpa [#allocation5], 0 }
   0x6   :  { %18 = vsyncpa [#allocation5 + $0x1], 0  ;;  %s839_s23 = smov 0   ;;  %s841_s24 = smov 0  }
   0x7   :  { %s843_s25 = smov 0   ;;  %s845_s26 = smov 0  }
   0x8   :  { %s847_s27 = smov 0   ;;  %s849_s28 = smov 0  }
   0x9 LB: > { %s587_s5 = sadd.s32 4294967295, %s798_s28   ;;  %s588_s29 = sadd.s32 4294967294, %s798_s28   ;;  %s798_s28 = sphi %s849_s28, %s24_s28   ;;  %s794_s27 = sphi %s847_s27, %s1003_s27   ;;  %s790_s26 = sphi %s845_s26, %s1002_s26   ;;  %s786_s25 = sphi %s843_s25, %s1001_s25   ;;  %s782_s24 = sphi %s841_s24, %s1000_s24   ;;  %s778_s23 = sphi %s839_s23, %s999_s23  }
   0xa   : > { %s36_s30 = sadd.s32 1, %s794_s27  ;;  %s73_s7 = sadd.s32 1, %s786_s25 }
   0xb   : > { %p38_p0 = scmp.ge.s32.totalorder %s36_s30, 2  ;;  %p80_p1 = scmp.ne.s32.totalorder %s786_s25, %s782_s24 }
   0xc   : > { %p81_p2 = scmp.eq.s32.totalorder %s798_s28, 0  ;;  %p86_p3 = scmp.ne.s32.totalorder %s782_s24, %s778_s23 }
   0xd   : > { %s1005_s30 = smov (%p38_p0, %s36_s30), 0  ;;  %p87_p5 = scmp.eq.s32.totalorder %s587_s5, 0 }
   0xe   : > { %p880_p4 = por %p81_p2, %p80_p1  ;;  %s68_s9 = ssub.s32 %s794_s27, %s1005_s30 }
   0xf   : > { %p196_p6 = scmp.eq.s32.totalorder %s587_s5, 1  ;;  %p71_p7 = scmp.eq.s32.totalorder %s68_s9, 0 }
  0x10   : > { %p886_p8 = por %p87_p5, %p86_p3  ;;  %p202_p10 = scmp.eq.s32.totalorder %s588_s29, 1 }
  0x11   : > { %p890_p9 = por %p196_p6, %p80_p1  ;;  %p590_p12 = scmp.ge.s32.totalorder %s798_s28, 2 }
  0x12   : > { %s895_s12 = scalar_select %p71_p7, %s786_s25, %s73_s7  }
  0x13   : > { %p897_p11 = por %p202_p10, %p86_p3  ;;  %p625_p13 = scmp.lt.s32.totalorder %s798_s28, 2 }
  0x14   : > { %s247_s14 = sand.u32 1, %s786_s25   ;;  %s610_s16 = sshll.u32 %s794_s27, 3 }
  0x15   : > { %s591_s15 = sshll.u32 %s247_s14, 3  ;;  %s258_s19 = scalar_lea.hbm %s987_s1, %s610_s16 }
  0x16   : > { %s251_s20 = scalar_lea.vmem [#allocation3], %s591_s15  ;;  %s260_s22 = sshll.u32 %s258_s19, 4  ;;  %s261_s22 = int_to_ptr.hbm [resolvable:$true] %s260_s22 }
  0x17   : > { %s262_s21 = sshll.u32 %s251_s20, 4  ;;  %p618_p0 = pnand %p625_p13, %p880_p4  ;;  %s263_s21 = int_to_ptr.vmem [resolvable:$true] %s262_s21 }
  0x18   : > { %p594_p1 = scmp.ge.s32.totalorder %s798_s28, 1  ;;  %p267_p2 = scmp.lt.s32.totalorder %s798_s28, 3 }
  0x19   : > { %s248_s5 = scalar_lea.sflag [#allocation4], %s247_s14 }
  0x1a   : > { %620 = dma.hbm_to_vmem [thread:$0]  (!%p618_p0), %s261_s22, 128, %s263_s21, %s248_s5  }
  0x1b   : > { %p268_p3 = pnand %p594_p1, %p267_p2 }
  0x1c   : > { %s913_s29 = sand.u32 (!%p268_p3), 1, %s782_s24  }
  0x1d   : > { %271 = sbr.rel (%p268_p3) target bundleno = 228 (0xe4), region = 44  ;;  %s595_s7 = sshll.u32 (!%p268_p3), %s913_s29, 3 }
  0x1e   : > { %s274_s9 = scalar_lea.sflag (!%p268_p3), [#allocation4], %s913_s29  ;;  %s277_s15 = scalar_lea.vmem (!%p268_p3), [#allocation3], %s595_s7 }
  0x22   : > { %769 = dma.done.wait (%p886_p8), %s274_s9, 128  }
  0x23   : > { %771 = vsyncadd (%p886_p8), %s274_s9, 4294967168  ;;  %v800_v1 = vmov 0   ;;  %v329_v2 = vld [vmem:[%s277_s15] sm:$0xff]  ;;  %v330_v3 = vld [vmem:[%s989_s3] sm:$0xff]  ;;  %vm344_vm0 = vcmask 1043456   ;;  %vm340_vm1 = vcmask 31744  }
  0x24   : > { %676 = vset.pattern.permute.xlu0 %v800_v1  ;;  %677 = vset.pattern.permute.xlu1 %v800_v1  ;;  %337 = vst [vmem:[#allocation1] ss:$2 sm:$0xff] %v329_v2  ;;  %v411_v4 = vld [vmem:[#allocation2] sm:$0x1]  ;;  %v328_v5 = vld [vmem:[%s988_s2] sm:$0xff]  ;;  %p317_p4 = scmp.lt.s32.totalorder %s790_s26, 1 }
  0x25   : > { %333 = vperm.xlu0 %676, %v330_v3   ;;  %414 = vperm.xlu1 %677, %v411_v4   ;;  %v391_v6 = vld [vmem:[%s990_s4] sm:$0xff]  ;;  %s612_s21 = sshll.u32 %s790_s26, 3  ;;  %s315_s14 = scalar_lea.vmem [#allocation6], %s595_s7 }
  0x26   : > { %s318_s19 = scalar_select %p317_p4, %s790_s26, 1 }
  0x27   : > { %s480_s26 = scalar_lea.hbm %s992_s6, %s612_s21  ;;  %s482_s16 = sshll.u32 %s315_s14, 4  ;;  %s483_s16 = int_to_ptr.vmem [resolvable:$true] %s482_s16 }
  0x28   : > { %s611_s20 = sshll.u32 %s318_s19, 3  ;;  %s484_s17 = sshll.u32 %s480_s26, 4  ;;  %s485_s17 = int_to_ptr.hbm [resolvable:$true] %s484_s17 }
  0x29   : > { %s324_s9 = scalar_lea.vmem %s986_s0, %s611_s20  ;;  %s467_s10 = scalar_lea.sflag [#allocation5], %s913_s29 }
  0x2a   : > { %v458_v61 = vld [vmem:[%s324_s9] sm:$0xff]  ;;  %s730_s18 = sshra.s32 %s485_s17, 4  ;;  %s736_s7 = scalar_lea.hbm %s992_s6, 16  ;;  %s731_s18 = int_to_ptr.hbm [resolvable:$true] %s730_s18 }
  0x2b   : > { %v338_v7 = vld.sshfl [vmem:[#allocation1] sm:$0xff pattern:$0x75316420]  ;;  %v339_v8 = vld.sshfl [vmem:[#allocation1 + $0x8] sm:$0xff pattern:$0x75316420]  ;;  %p737_p8 = scmp.lt.s32.totalorder %s731_s18, %s992_s6 }
  0x2c   : > { %599 = vmatpush.msk.msra.mxu0 %vm344_vm0, %v338_v7  ;;  %601 = vmatpush.msk.msra.mxu1 %vm344_vm0, %v339_v8  ;;  %s732_s19 = scalar_lea.hbm %s731_s18, 8 }
  0x2d   : > { %600 = vmatmul.msk.f32.vlgmr.msra.gmra.mxu0 %vm340_vm1, %v328_v5  ;;  %602 = vmatmul.msk.f32.vlgmr.msra.gmra.mxu1 %vm340_vm1, %v328_v5  ;;  %p733_p5 = scmp.ne.s32.totalorder %s731_s18, %s732_s19  ;;  %p738_p10 = scmp.lt.s32.totalorder %s736_s7, %s732_s19 }
  0x2e   : > { %394 = vperm.xlu0 %676, %v391_v6  }
  0x2f   : > { %p734_p6 = pnand %p733_p5, %p890_p9  ;;  %p739_p13 = por %p738_p10, %p737_p8 }
  0x31   : > { %p735_p7 = pneg %p734_p6 }
  0x33   : > { %p740_p0 = pnand %p739_p13, %p735_p7 }
  0x97   : > { %v334_v9 = vpop.permute.xlu0 %333  ;;  %v415_v25 = vpop.permute.xlu1 %414 }
  0x98   : > { %v417_v30 = vperm.slane %v415_v25, 0 }
  0xa0   : > { %v395_v16 = vpop.permute.xlu0 %394 }
  0xaa   : > { %v366_v10 = vpop.f32.mrf.mxu0  ;;  %v386_v11 = vpop.f32.mrf.mxu1 }
  0xab   : > { %v367_v12 = vadd.f32 %v366_v10, %v334_v9  ;;  %v387_v13 = vadd.f32 %v386_v11, %v334_v9 }
  0xad   : > { %v389_v14 = vmax.f32 %v367_v12, 0.0  ;;  %v390_v15 = vmax.f32 %v387_v13, 0.0 }
  0xaf   : > { %v397_v17 = vmul.f32 %v395_v16, %v389_v14  ;;  %v398_v18 = vmul.f32 %v395_v16, %v390_v15 }
  0xb1   : > { %v399_v19 = vrot.slane %v397_v17, 4  ;;  %v405_v20 = vrot.slane %v398_v18, 4 }
  0xb3   : > { %v400_v21 = vadd.f32 %v399_v19, %v397_v17  ;;  %v406_v22 = vadd.f32 %v405_v20, %v398_v18 }
  0xb5   : > { %v401_v23 = vrot.slane %v400_v21, 2  ;;  %v407_v24 = vrot.slane %v406_v22, 2 }
  0xb7   : > { %v402_v26 = vadd.f32 %v401_v23, %v400_v21  ;;  %v408_v27 = vadd.f32 %v407_v24, %v406_v22 }
  0xb9   : > { %v403_v28 = vrot.slane %v402_v26, 1  ;;  %v409_v29 = vrot.slane %v408_v27, 1 }
  0xbb   : > { %v404_v31 = vadd.f32 %v403_v28, %v402_v26  ;;  %v410_v32 = vadd.f32 %v409_v29, %v408_v27 }
  0xbd   : > { %v418_v33 = vadd.f32 %v417_v30, %v404_v31  ;;  %v419_v34 = vadd.f32 %v417_v30, %v410_v32 }
  0xbf   : > { %v603_v35 = vmul.f32 -1.442695, %v418_v33  ;;  %v604_v36 = vmul.f32 -1.442695, %v419_v34 }
  0xc1   : > { %678 = vpow2.f32 %v603_v35 }
  0xc2   : > { %680 = vpow2.f32 %v604_v36 }
  0xc7   : > { %v679_v37 = vpop.eup %678 }
  0xc8   : > { %v681_v38 = vpop.eup %680  ;;  %v426_v39 = vadd.f32 1.0, %v679_v37 }
  0xc9   : > { %v427_v40 = vadd.f32 1.0, %v681_v38 }
  0xca   : > { %682 = vrcp.f32 %v426_v39  ;;  %vm433_vm4 = vweird.f32 %v426_v39  ;;  %v439_v51 = vand.u32 2147483648, %v426_v39  ;;  %v437_v55 = vand.u32 2147483647, %v426_v39 }
  0xcb   : > { %684 = vrcp.f32 %v427_v40  ;;  %v454_v48 = vand.u32 2147483648, %v427_v40  ;;  %v452_v50 = vand.u32 2147483647, %v427_v40  ;;  %vm448_vm5 = vweird.f32 %v427_v40 }
  0xcc   : > { %v440_v59 = vor.u32 1.1754944e-38, %v439_v51  ;;  %vm438_vm9 = vcmp.eq.f32.partialorder %v437_v55, 8.507059e+37 }
  0xcd   : > { %v455_v56 = vor.u32 1.1754944e-38, %v454_v48  ;;  %vm453_vm8 = vcmp.eq.f32.partialorder %v452_v50, 8.507059e+37 }
  0xd0   : > { %v683_v41 = vpop.eup %682 }
  0xd1   : > { %v685_v42 = vpop.eup %684  ;;  %v429_v43 = vmul.f32 %v683_v41, %v426_v39  ;;  %vm434_vm2 = vweird.f32 %v683_v41 }
  0xd2   : > { %v444_v44 = vmul.f32 %v685_v42, %v427_v40  ;;  %vm449_vm3 = vweird.f32 %v685_v42  ;;  %vm937_vm6 = vmor %vm433_vm4, %vm434_vm2 }
  0xd3   : > { %v430_v45 = vsub.f32 1.0, %v429_v43  ;;  %vm450_vm7 = vmor %vm448_vm5, %vm449_vm3 }
  0xd4   : > { %v445_v46 = vsub.f32 1.0, %v444_v44 }
  0xd5   : > { %v431_v47 = vmul.f32 %v683_v41, %v430_v45 }
  0xd6   : > { %v446_v49 = vmul.f32 %v685_v42, %v445_v46 }
  0xd7   : > { %v432_v52 = vadd.f32 %v683_v41, %v431_v47 }
  0xd8   : > { %v447_v53 = vadd.f32 %v685_v42, %v446_v49 }
  0xd9   : > { %v436_v57 = vsel %vm937_vm6, %v683_v41, %v432_v52 }
  0xda   : > { %v451_v58 = vsel %vm450_vm7, %v685_v42, %v447_v53  ;;  %v441_v63 = vsel %vm438_vm9, %v440_v59, %v436_v57 }
  0xdb   : > { %v456_v60 = vsel %vm453_vm8, %v455_v56, %v451_v58 }
  0xdc   : > { %v461_v62 = vrot.slane %v456_v60, 4 }
  0xde   : > { %v462_v0 = vsel %vm344_vm0, %v441_v63, %v461_v62 }
  0xdf   : > { %v464_v1 = vmul.f32 %v462_v0, %v458_v61 }
  0xe1   : > { %465 = vst [vmem:[%s315_s14] sm:$0xff] %v464_v1 }
  0xe2   : > { %743 = shalt.err (!%p740_p0)
}
  0xe3   : > { %615 = dma.vmem_to_hbm [thread:$0]  (%p890_p9), %s483_s16, 128, %s485_s17, %s467_s10  }
  0xe4 PF: > { %s496_s29 = sand.u32 1, %s778_s23   ;;  %p622_p1 = pnand %p590_p12, %p897_p11 }
  0xe5   : > { %s497_s9 = scalar_lea.sflag [#allocation5], %s496_s29 }
  0xe6   : > { %p623_p2 = pneg %p622_p1 }
  0xe8   : > { %773 = dma.done.wait (%p623_p2), %s497_s9, 128  }
  0xe9   : > { %775 = vsyncadd (%p623_p2), %s497_s9, 4294967168  ;;  %s24_s28 = sadd.s32 1, %s798_s28   ;;  %s999_s23 = smov %s782_s24 }
  0xea   : > { %p21_p3 = scmp.ge.s32.totalorder %s24_s28, 4   ;;  %s1000_s24 = smov %s786_s25 }
  0xeb   : > { %s1001_s25 = smov %s895_s12  ;;  %s1002_s26 = smov %s794_s27 }
  0xec   : > { %s1003_s27 = smov %s1005_s30  ;;  %23 = sbr.rel (!%p21_p3) target bundleno = 9 (0x9), region = 92 }
  0xf1   :  { %503 = vsyncpa [#allocation4], 1 }
  0xf2   :  { %505 = vsyncpa [#allocation4 + $0x1], 1 }
  0xf3   :  { %506 = vsyncpa [#allocation5], 1 }
  0xf4   :  { %508 = vsyncpa [#allocation5 + $0x1], 1 }

</bundles_post_ra>
